<compile_context>
chip_gen: v7x
topology: tpu7x:2x2x1
jax: 0.10.0
libtpu: 0.0.40
codegen_flags: <defaults>
</compile_context>

<pallas_src>
import jax
import jax.numpy as jnp
from jax.experimental import pallas as pl
from jax.experimental.pallas import tpu as pltpu


def _pos_add_kernel(emb_ref, x_ref, o_ref):
    # emb_ref: (1, tile_l) -- broadcast over the sublane (batch) axis.
    # x_ref / o_ref: (tile_b, tile_l).  Pure VPU add (promotes if x is narrower).
    o_ref[...] = (x_ref[...] + emb_ref[...]).astype(o_ref.dtype)


def _round_down(v, m):
    return (v // m) * m


def _choose_tiles(batch, flat_len, itemsize, target_bytes=4 * 1024 * 1024):
    """Pick (tile_b, tile_l) for a (batch, flat_len) streaming add.

    Legality: tile_b is a multiple of 8 OR == batch (full extent);
              tile_l is a multiple of 128 OR == flat_len (full extent).
    Ragged final blocks (cdiv grids) are handled by Pallas.
    """
    target_elems = max(128, target_bytes // max(1, itemsize))

    min_b = batch if batch < 8 else 8
    per_row = max(128, target_elems // min_b)

    if flat_len <= per_row:
        tile_l = flat_len                            # full lane extent: always legal
    else:
        tile_l = max(128, _round_down(per_row, 128))  # large multiple of 128

    max_b = max(1, target_elems // tile_l)
    if max_b >= batch or batch <= 8:
        tile_b = batch                               # full sublane extent: always legal
    else:
        tile_b = max(8, _round_down(min(max_b, batch), 8))
    return tile_b, tile_l


def dynamic_position_embedding(x, embedding_table):
    """Pallas implementation of DynamicPositionEmbedding.forward.

    x:               (batch, seq_len, dim)
    embedding_table: (max_len, dim), max_len >= seq_len
    returns:         (batch, seq_len, dim), dtype = promote(x.dtype, table.dtype)
    """
    batch, seq_len, dim = x.shape
    max_len, dim_e = embedding_table.shape
    assert dim == dim_e and seq_len <= max_len

    # PyTorch `embedding(pos) + x` promotes dtypes (e.g. bf16 x + f32 table -> f32).
    out_dtype = jnp.promote_types(x.dtype, embedding_table.dtype)

    # Slice (and cast) the trailing rows once in the wrapper: only the rows that
    # are actually used ever reach the kernel, already in the output dtype.
    start = max_len - seq_len
    emb = jax.lax.slice_in_dim(embedding_table, start, start + seq_len, axis=0)
    emb = emb.astype(out_dtype)

    # Flatten (seq, dim) -> lane axis: lane-dense output regardless of dim,
    # and the per-batch-row positional pattern becomes a single (1, L) row.
    flat_len = seq_len * dim
    x2d = x.reshape(batch, flat_len)
    emb2d = emb.reshape(1, flat_len)

    x_itemsize = jnp.dtype(x.dtype).itemsize
    o_itemsize = jnp.dtype(out_dtype).itemsize
    tile_b, tile_l = _choose_tiles(batch, flat_len, max(x_itemsize, o_itemsize))

    n_l = pl.cdiv(flat_len, tile_l)   # outer: embedding block index changes here only
    n_b = pl.cdiv(batch, tile_b)      # inner: embedding block stays resident

    # 3 streams (x in, out, emb in), double-buffered, plus margin.
    working = 2 * (tile_b * tile_l * (x_itemsize + o_itemsize) + tile_l * o_itemsize)
    vmem_limit = int(min(48 << 20, max(32 << 20, working + (4 << 20))))

    out2d = pl.pallas_call(
        _pos_add_kernel,
        out_shape=jax.ShapeDtypeStruct((batch, flat_len), out_dtype),
        grid_spec=pltpu.PrefetchScalarGridSpec(
            num_scalar_prefetch=0,
            grid=(n_l, n_b),
            in_specs=[
                # emb index depends only on the OUTER lane axis -> no re-DMA
                # across the inner batch loop (effectively resident).
                pl.BlockSpec((1, tile_l), lambda l, b: (0, l)),
                pl.BlockSpec((tile_b, tile_l), lambda l, b: (b, l)),
            ],
            out_specs=pl.BlockSpec((tile_b, tile_l), lambda l, b: (b, l)),
        ),
        compiler_params=pltpu.CompilerParams(
            dimension_semantics=("parallel", "parallel"),
            vmem_limit_bytes=vmem_limit,
        ),
    )(emb2d, x2d)
    return out2d.reshape(batch, seq_len, dim)


if __name__ == "__main__":
    # Small shapes consistent with the module: max_len=16, dim=32, batch=2, seq_len=8.
    max_len, dim = 16, 32
    batch, seq_len = 2, 8

    key = jax.random.PRNGKey(0)
    k_emb, k_x = jax.random.split(key)

    # nn.Embedding default init ~ N(0, 1); deterministic synthetic weights.
    embedding_table = jax.random.normal(k_emb, (max_len, dim), dtype=jnp.float32)
    x = jax.random.normal(k_x, (batch, seq_len, dim), dtype=jnp.float32)

    out = jax.block_until_ready(dynamic_position_embedding(x, embedding_table))
    ref = embedding_table[max_len - seq_len:][None, :, :] + x
    assert out.shape == (batch, seq_len, dim)
    assert out.dtype == ref.dtype
    assert jnp.allclose(out, ref, atol=1e-6), "mismatch vs reference"

    # seq_len == max_len (start == 0).
    x_full = jax.random.normal(k_x, (batch, max_len, dim), dtype=jnp.float32)
    out_full = jax.block_until_ready(dynamic_position_embedding(x_full, embedding_table))
    ref_full = embedding_table[None, :, :] + x_full
    assert jnp.allclose(out_full, ref_full, atol=1e-6), "mismatch vs reference (full seq)"

    # Mixed precision: bf16 x + f32 table -> f32 output (PyTorch promotion semantics).
    x_bf16 = x.astype(jnp.bfloat16)
    out_mix = jax.block_until_ready(dynamic_position_embedding(x_bf16, embedding_table))
    ref_mix = embedding_table[max_len - seq_len:][None, :, :] + x_bf16.astype(jnp.float32)
    assert out_mix.dtype == jnp.float32
    assert jnp.allclose(out_mix, ref_mix, atol=1e-3), "mismatch vs reference (mixed dtype)"

    # Odd/small shapes (non-multiple-of-8 seq/batch, lane width < 128): full-extent blocks.
    b2, s2, d2, m2 = 3, 5, 24, 7
    x_odd = jax.random.normal(k_x, (b2, s2, d2), dtype=jnp.float32)
    emb_odd = jax.random.normal(k_emb, (m2, d2), dtype=jnp.float32)
    out_odd = jax.block_until_ready(dynamic_position_embedding(x_odd, emb_odd))
    ref_odd = emb_odd[m2 - s2:][None, :, :] + x_odd
    assert jnp.allclose(out_odd, ref_odd, atol=1e-6), "mismatch vs reference (odd shapes)"

    print("KERNEL_OK")
</pallas_src>

<mosaic_0001>
module attributes {stable_mosaic.version = 11 : i64} {
  func.func @_pos_add_kernel(%arg0: i32, %arg1: i32, %arg2: memref<1x256xf32, #tpu.memory_space<vmem>>, %arg3: memref<2x256xf32, #tpu.memory_space<vmem>>, %arg4: memref<2x256xf32, #tpu.memory_space<vmem>>) attributes {dimension_semantics = [#tpu.dimension_semantics<parallel>, #tpu.dimension_semantics<parallel>], iteration_bounds = array<i64: 1, 1>, scalar_prefetch = 0 : i64, scratch_operands = 0 : i64, tpu.core_type = #tpu.core_type<tc>, window_params = [{transform_indices = @transform_0, window_bounds = array<i64: 1, 256>}, {transform_indices = @transform_1, window_bounds = array<i64: 2, 256>}, {transform_indices = @transform_2, window_bounds = array<i64: 2, 256>}]} {
    %c0 = arith.constant 0 : index
    %c0_0 = arith.constant 0 : index
    %0 = vector.load %arg3[%c0, %c0_0] : memref<2x256xf32, #tpu.memory_space<vmem>>, vector<2x256xf32>
    %c0_1 = arith.constant 0 : index
    %c0_2 = arith.constant 0 : index
    %1 = vector.load %arg2[%c0_1, %c0_2] : memref<1x256xf32, #tpu.memory_space<vmem>>, vector<1x256xf32>
    %2 = vector.broadcast %1 : vector<1x256xf32> to vector<2x256xf32>
    %3 = arith.addf %0, %2 : vector<2x256xf32>
    %c0_3 = arith.constant 0 : index
    %c0_4 = arith.constant 0 : index
    %4 = vector.load %arg4[%c0_3, %c0_4] : memref<2x256xf32, #tpu.memory_space<vmem>>, vector<2x256xf32>
    tpu.vector_store %arg4[%c0_3, %c0_4], %3 {strides = array<i32>} : memref<2x256xf32, #tpu.memory_space<vmem>>, vector<2x256xf32>,
    return
  }
  func.func @transform_0(%arg0: i32, %arg1: i32) -> (i32, i32) {
    %c0_i32 = arith.constant 0 : i32
    %c0_i32_0 = arith.constant 0 : i32
    return %c0_i32, %arg0 : i32, i32
  }
  func.func @transform_1(%arg0: i32, %arg1: i32) -> (i32, i32) {
    %c0_i32 = arith.constant 0 : i32
    return %arg1, %arg0 : i32, i32
  }
  func.func @transform_2(%arg0: i32, %arg1: i32) -> (i32, i32) {
    %c0_i32 = arith.constant 0 : i32
    return %arg1, %arg0 : i32, i32
  }
}

</mosaic_0001>

<bundles_post_ra>
// kernel: tpu_custom_call.1
= control target key start
LH: loop header
LB: loop body
LE: loop exit
PB: predicated region body
PF: predicated region fallthrough
CT: control target
= control target key end

     0   :  { %7 = vsyncpa [#allocation3], 0  ;;  %s205_s0 = inlined_call_operand.hbm [shape: f32[1,256], index: 0, kind: input, shape index: {}]   ;;  %s206_s1 = inlined_call_operand.hbm [shape: f32[2,256], index: 1, kind: input, shape index: {}]   ;;  %s207_s2 = inlined_call_operand.hbm [shape: f32[2,256], index: 2, kind: output, shape index: {}]  }
   0x1   :  { %8 = vsyncpa [#allocation6], 0 }
   0x2   :  { %9 = vsyncpa [#allocation4], 0  ;;  %s150_s9 = smov [#allocation2]   ;;  %s151_s11 = smov [#allocation5]  }
   0x3   :  { %s16_s10 = sshll.u32 %s150_s9, 4  ;;  %s26_s12 = sshll.u32 %s151_s11, 4  ;;  %s17_s10 = int_to_ptr.vmem [resolvable:$true] %s16_s10  ;;  %s27_s12 = int_to_ptr.vmem [resolvable:$true] %s26_s12 }
   0x4   :  { %s78_s15 = scalar_lea.hbm %s205_s0, 32 }
   0x5   :  { %p79_p0 = scmp.ne.s32.totalorder %s205_s0, %s78_s15  ;;  %p82_p1 = scmp.lt.u32.totalorder %s78_s15, %s205_s0 }
   0x7   :  { %p84_p2 = pnand %p82_p1, %p79_p0 }
   0x9   :  { %87 = shalt.err (!%p84_p2)
}
   0xa   :  { %s88_s20 = scalar_lea.vmem %s17_s10, 32  ;;  %p93_p4 = scmp.lt.s32.totalorder %s17_s10, %s17_s10 }
   0xb   :  { %p89_p3 = scmp.ne.s32.totalorder %s17_s10, %s88_s20  ;;  %p94_p5 = scmp.lt.s32.totalorder %s88_s20, %s88_s20 }
   0xd   :  { %p95_p6 = por %p94_p5, %p93_p4 }
   0xf   :  { %p96_p7 = pnand %p95_p6, %p89_p3 }
  0x11   :  { %99 = shalt.err (!%p96_p7)
}
  0x12   :  { %19 = dma.hbm_to_vmem [thread:$0]  %s205_s0, 32, %s17_s10, [#allocation3]  }
  0x13   :  { %s100_s25 = scalar_lea.hbm %s206_s1, 64 }
  0x14   :  { %p101_p8 = scmp.ne.s32.totalorder %s206_s1, %s100_s25  ;;  %p104_p9 = scmp.lt.u32.totalorder %s100_s25, %s206_s1 }
  0x16   :  { %p106_p10 = pnand %p104_p9, %p101_p8 }
  0x18   :  { %109 = shalt.err (!%p106_p10)
}
  0x19   :  { %s110_s30 = scalar_lea.vmem %s27_s12, 64  ;;  %p115_p12 = scmp.lt.s32.totalorder %s27_s12, %s27_s12 }
  0x1a   :  { %p111_p11 = scmp.ne.s32.totalorder %s27_s12, %s110_s30  ;;  %p116_p13 = scmp.lt.s32.totalorder %s110_s30, %s110_s30 }
  0x1c   :  { %p117_p0 = por %p116_p13, %p115_p12 }
  0x1e   :  { %p118_p1 = pnand %p117_p0, %p111_p11 }
  0x20   :  { %121 = shalt.err (!%p118_p1)
}
  0x21   :  { %29 = dma.hbm_to_vmem [thread:$0]  %s206_s1, 64, %s27_s12, [#allocation6]  }
  0x22   :  { %144 = dma.done.wait [#allocation3], 32  }
  0x23   :  { %145 = vsyncadd [#allocation3], 4294967264 }
  0x24   :  { %146 = dma.done.wait [#allocation6], 64  }
  0x25   :  { %147 = vsyncadd [#allocation6], 4294967232  ;;  %v39_v0 = vlaneseq  ;;  %v152_v1 = vmov 1983009808   ;;  %v37_v7 = vld [vmem:[#allocation2] sm:$0x3] }
  0x26   :  { %v49_v2 = vunpack.c.l.s4 %v152_v1  ;;  %v36_v12 = vld [vmem:[#allocation5] sm:$0xf]  ;;  %s153_s4 = smov [#allocation7]  }
  0x27   :  { %v40_v3 = vshrl.u32 %v39_v0, 7  ;;  %s64_s5 = sshll.u32 %s153_s4, 4  ;;  %s65_s5 = int_to_ptr.vmem [resolvable:$true] %s64_s5 }
  0x28   :  { %v50_v6 = vunpack.c.0.s8 %v49_v2  ;;  %s122_s1 = scalar_lea.vmem %s65_s5, 64  ;;  %p127_p3 = scmp.lt.s32.totalorder %s65_s5, %s65_s5 }
  0x29   :  { %v41_v4 = vsub.s32 0, %v40_v3  ;;  %v45_v5 = vsub.s32 1, %v40_v3  ;;  %p123_p2 = scmp.ne.s32.totalorder %s65_s5, %s122_s1  ;;  %p128_p4 = scmp.lt.s32.totalorder %s122_s1, %s122_s1 }
  0x2a   :  { %v53_v10 = vsub.s32 %v50_v6, %v40_v3 }
  0x2b   :  { %v42_v8 = vrot.slane %v37_v7, %v41_v4  ;;  %v46_v9 = vrot.slane %v37_v7, %v45_v5  ;;  %p129_p5 = por %p128_p4, %p127_p3 }
  0x2d   :  { %v47_v11 = vcombine.low %v42_v8, %v46_v9  ;;  %p130_p6 = pnand %p129_p5, %p123_p2 }
  0x2f   :  { %v54_v13 = vrot.slane %v47_v11, %v53_v10 }
  0x31   :  { %v56_v14 = vadd.f32 %v54_v13, %v36_v12 }
  0x33   :  { %57 = vst [vmem:[#allocation7] sm:$0xf] %v56_v14 }
  0x34   :  { %133 = shalt.err (!%p130_p6)
}
  0x35   :  { %s134_s8 = scalar_lea.hbm %s207_s2, 64 }
  0x36   :  { %p135_p7 = scmp.ne.s32.totalorder %s207_s2, %s134_s8  ;;  %p138_p8 = scmp.lt.u32.totalorder %s134_s8, %s207_s2 }
  0x38   :  { %p140_p9 = pnand %p138_p8, %p135_p7 }
  0x3a   :  { %143 = shalt.err (!%p140_p9)
}
  0x3b   :  { %67 = dma.vmem_to_hbm [thread:$0]  %s65_s5, 64, %s207_s2, [#allocation4]  }
  0x3c   :  { %148 = dma.done.wait [#allocation4], 64  }
  0x3d   :  { %149 = vsyncadd [#allocation4], 4294967232 }
  0x3e   :  { %71 = vsyncpa [#allocation3], 1 }
  0x3f   :  { %72 = vsyncpa [#allocation6], 1 }
  0x40   :  { %73 = vsyncpa [#allocation4], 1 }

</bundles_post_ra>
